<compile_context>
chip_gen: v6e
topology: v6e:2x2x1
jax: 0.10.0
libtpu: 0.0.40
codegen_flags: <defaults>
</compile_context>

<pallas_src>
import functools

import jax
import jax.numpy as jnp
from jax import lax
from jax.experimental import pallas as pl
from jax.experimental.pallas import tpu as pltpu

PRIMITIVES = ("none", "skip_connect", "nor_conv_1x1", "nor_conv_3x3", "avg_pool_3x3")


def _mixed_op_kernel(aw_ref, x_ref, wband_ref, pband_ref, invmap_ref, bias_ref,
                     o_ref, xpad_ref, *, H, WC):
    # x_ref block: (1, H, W*C) f32, lane-dense.
    x = x_ref[0]                                           # (H, WC)

    # Row-padded halo buffer (raw x; halo rows are zero). Width padding is not
    # needed: out-of-range dx taps are simply absent from the band weights.
    zrow = jnp.zeros((1, WC), jnp.float32)
    xpad_ref[0:1, :] = zrow
    xpad_ref[H + 1:H + 2, :] = zrow
    xpad_ref[1:1 + H, :] = x

    # op 0 'none' contributes 0;  op 1 'skip_connect' (identity).
    acc = aw_ref[1] * x

    r0 = xpad_ref[0:H, :]                                  # dy = -1 rows (raw)
    r2 = xpad_ref[2:2 + H, :]                              # dy = +1 rows (raw)

    # ops 2+3: ReLU -> (1x1 and 3x3 conv) -> folded BN, as 3 banded MXU matmuls.
    # arch weights, BN scales and the 1x1 conv are folded into wband in the wrapper.
    acc += jnp.dot(jnp.maximum(r0, 0.0), wband_ref[0],
                   preferred_element_type=jnp.float32)
    acc += jnp.dot(jnp.maximum(x, 0.0), wband_ref[1],
                   preferred_element_type=jnp.float32)
    acc += jnp.dot(jnp.maximum(r2, 0.0), wband_ref[2],
                   preferred_element_type=jnp.float32)

    # op 4 'avg_pool_3x3' (stride 1, pad 1, count_include_pad=False) -> folded BN.
    # Separable: VPU sum over dy rows, banded matmul for the dx sum, then multiply
    # by the precomputed arch_w * bn_scale / valid_count map.
    acc += jnp.dot(r0 + x + r2, pband_ref[...],
                   preferred_element_type=jnp.float32) * invmap_ref[...]

    # Combined folded BN biases (conv1x1 + conv3x3 + pool), broadcast over rows.
    acc += bias_ref[...]

    o_ref[0] = acc.astype(o_ref.dtype)


def mixed_op(x_nchw, arch_w, w1_oihw, w3_oihw, bn_scales, bn_biases):
    """x_nchw: (N, C, H, W) f32;  arch_w: (5,) f32;  returns (N, C, H, W) f32."""
    N, C, H, W = x_nchw.shape
    WC = W * C
    f32 = jnp.float32

    # NHWC with W and C fused on the trailing (lane) axis; free reshape, no pad.
    x = jnp.transpose(x_nchw, (0, 2, 3, 1)).reshape(N, H, WC).astype(f32)

    aw = arch_w.astype(f32)
    scale1, scale3, scale_p = bn_scales[0], bn_scales[1], bn_scales[2]
    bias1, bias3, bias_p = bn_biases[0], bn_biases[1], bn_biases[2]

    # --- banded conv weights (3, W*C, W*C):
    #     wband[r, w_in*C+ci, w_out*C+co] = aw3*scale3[co]*w3[co,ci,r,w_in-w_out+1]
    #     for |w_in-w_out| <= 1, plus the folded 1x1 conv on the r=1 diagonal blocks.
    wi = jnp.arange(W)
    d = wi[:, None] - wi[None, :]                          # w_in - w_out
    valid = (jnp.abs(d) <= 1).astype(f32)                  # (W, W) band mask
    s_idx = jnp.clip(d + 1, 0, 2)                          # kernel-width index

    w3_eff = w3_oihw.astype(f32) * (aw[3] * scale3)[:, None, None, None]   # (co,ci,3,3)
    w3_e = jnp.transpose(w3_eff, (2, 3, 1, 0))             # (r, s, ci, co)
    blocks = w3_e[:, s_idx, :, :]                          # (3, W_in, W_out, ci, co)
    blocks = blocks * valid[None, :, :, None, None]
    w1_eff = w1_oihw[:, :, 0, 0].astype(f32) * (aw[2] * scale1)[:, None]   # (co, ci)
    center = (d == 0).astype(f32)[:, :, None, None] * w1_eff.T[None, None, :, :]
    blocks = blocks.at[1].add(center)
    wband = jnp.transpose(blocks, (0, 1, 3, 2, 4)).reshape(3, WC, WC)

    # --- pool band: channel-identity, 3-wide band across width.
    pband = (valid[:, None, :, None] * jnp.eye(C, dtype=f32)[None, :, None, :]
             ).reshape(WC, WC)

    # --- per-position pool map: aw4 * bn_scale / valid-count (count_include_pad=False).
    hh = jnp.arange(H)
    ww = jnp.arange(W)
    rv = 1.0 + (hh > 0).astype(f32) + (hh < H - 1).astype(f32)
    cv = 1.0 + (ww > 0).astype(f32) + (ww < W - 1).astype(f32)
    invmap = ((aw[4] * scale_p)[None, None, :]
              / (rv[:, None, None] * cv[None, :, None])).reshape(H, WC)

    # --- combined folded biases, tiled to the fused layout.
    bias_row = jnp.tile(aw[2] * bias1 + aw[3] * bias3 + aw[4] * bias_p, (W,))[None, :]

    kernel = functools.partial(_mixed_op_kernel, H=H, WC=WC)
    out = pl.pallas_call(
        kernel,
        out_shape=jax.ShapeDtypeStruct((N, H, WC), f32),
        grid=(N,),
        in_specs=[
            pl.BlockSpec(memory_space=pltpu.MemorySpace.SMEM),      # arch weights (5,)
            pl.BlockSpec((1, H, WC), lambda n: (n, 0, 0)),          # x (lane-dense)
            pl.BlockSpec((3, WC, WC), lambda n: (0, 0, 0)),         # conv band weights
            pl.BlockSpec((WC, WC), lambda n: (0, 0)),               # pool band
            pl.BlockSpec((H, WC), lambda n: (0, 0)),                # pool scale map
            pl.BlockSpec((1, WC), lambda n: (0, 0)),                # folded biases
        ],
        out_specs=pl.BlockSpec((1, H, WC), lambda n: (n, 0, 0)),
        scratch_shapes=[pltpu.VMEM((H + 2, WC), f32)],              # row-halo buffer
        compiler_params=pltpu.CompilerParams(dimension_semantics=("parallel",)),
    )(aw, x, wband, pband, invmap, bias_row)
    return jnp.transpose(out.reshape(N, H, W, C), (0, 3, 1, 2))     # back to NCHW


def ref_mixed_op(x, arch_w, w1, w3, scales, biases):
    """Pure-JAX (XLA) reference with the same semantics, NCHW."""
    def bn(y, i):
        return y * scales[i][None, :, None, None] + biases[i][None, :, None, None]

    xr = jnp.maximum(x, 0.0)
    dn = ("NCHW", "OIHW", "NCHW")
    y1 = bn(lax.conv_general_dilated(xr, w1, (1, 1), "SAME", dimension_numbers=dn), 0)
    y3 = bn(lax.conv_general_dilated(xr, w3, (1, 1), "SAME", dimension_numbers=dn), 1)
    psum = lax.reduce_window(x, 0.0, lax.add, (1, 1, 3, 3), (1, 1, 1, 1), "SAME")
    cnt = lax.reduce_window(jnp.ones_like(x), 0.0, lax.add, (1, 1, 3, 3), (1, 1, 1, 1), "SAME")
    yp = bn(psum / cnt, 2)
    return arch_w[1] * x + arch_w[2] * y1 + arch_w[3] * y3 + arch_w[4] * yp


if __name__ == "__main__":
    N, C, H, W = 2, 8, 16, 16        # W*C = 128 -> exactly one lane width
    key = jax.random.PRNGKey(0)
    ks = jax.random.split(key, 12)

    x = jax.random.normal(ks[0], (N, C, H, W), jnp.float32)
    arch_w = jax.nn.softmax(jax.random.normal(ks[1], (len(PRIMITIVES),), jnp.float32))

    # Conv weights (PyTorch OIHW layout), bias=False as in ReLUConvBN.
    w1 = 0.1 * jax.random.normal(ks[2], (C, C, 1, 1), jnp.float32)
    w3 = 0.1 * jax.random.normal(ks[3], (C, C, 3, 3), jnp.float32)

    # BatchNorm params for [conv1x1-BN, conv3x3-BN, pool-BN], inference-mode running stats.
    eps = 1e-5
    gammas = 1.0 + 0.1 * jax.random.normal(ks[4], (3, C), jnp.float32)
    betas = 0.1 * jax.random.normal(ks[5], (3, C), jnp.float32)
    rmeans = 0.1 * jax.random.normal(ks[6], (3, C), jnp.float32)
    rvars = 1.0 + 0.2 * jax.random.uniform(ks[7], (3, C), jnp.float32)
    scales = gammas / jnp.sqrt(rvars + eps)
    biases = betas - rmeans * scales

    out = jax.block_until_ready(mixed_op(x, arch_w, w1, w3, scales, biases))
    ref = jax.block_until_ready(ref_mixed_op(x, arch_w, w1, w3, scales, biases))

    assert out.shape == (N, C, H, W) and out.dtype == jnp.float32
    assert jnp.allclose(out, ref, atol=1e-4, rtol=1e-4), float(jnp.max(jnp.abs(out - ref)))
    print("KERNEL_OK")
</pallas_src>

<mosaic_0001>
module attributes {stable_mosaic.version = 11 : i64} {
  func.func @_mixed_op_kernel(%arg0: i32, %arg1: memref<5xf32, #tpu.memory_space<smem>>, %arg2: memref<1x16x128xf32, #tpu.memory_space<vmem>>, %arg3: memref<3x128x128xf32, #tpu.memory_space<vmem>>, %arg4: memref<128x128xf32, #tpu.memory_space<vmem>>, %arg5: memref<16x128xf32, #tpu.memory_space<vmem>>, %arg6: memref<1x128xf32, #tpu.memory_space<vmem>>, %arg7: memref<1x16x128xf32, #tpu.memory_space<vmem>>, %arg8: memref<18x128xf32, #tpu.memory_space<vmem>>) attributes {dimension_semantics = [#tpu.dimension_semantics<parallel>], iteration_bounds = array<i64: 2>, scalar_prefetch = 0 : i64, scratch_operands = 1 : i64, tpu.core_type = #tpu.core_type<tc>, window_params = [{transform_indices = @transform_0, window_bounds = array<i64: 5>}, {transform_indices = @transform_1, window_bounds = array<i64: 1, 16, 128>}, {pipeline_mode = #tpu.pipeline_mode<synchronous>, transform_indices = @transform_2, window_bounds = array<i64: 3, 128, 128>}, {pipeline_mode = #tpu.pipeline_mode<synchronous>, transform_indices = @transform_3, window_bounds = array<i64: 128, 128>}, {pipeline_mode = #tpu.pipeline_mode<synchronous>, transform_indices = @transform_4, window_bounds = array<i64: 16, 128>}, {pipeline_mode = #tpu.pipeline_mode<synchronous>, transform_indices = @transform_5, window_bounds = array<i64: 1, 128>}, {transform_indices = @transform_6, window_bounds = array<i64: 1, 16, 128>}]} {
    %c0 = arith.constant 0 : index
    %c0_0 = arith.constant 0 : index
    %c0_1 = arith.constant 0 : index
    %0 = vector.load %arg2[%c0, %c0_0, %c0_1] : memref<1x16x128xf32, #tpu.memory_space<vmem>>, vector<1x16x128xf32>
    %1 = vector.shape_cast %0 : vector<1x16x128xf32> to vector<16x128xf32>
    %cst = arith.constant 0.000000e+00 : f32
    %2 = vector.broadcast %cst : f32 to vector<1x128xf32>
    %c0_2 = arith.constant 0 : index
    %c0_3 = arith.constant 0 : index
    %3 = vector.load %arg8[%c0_2, %c0_3] : memref<18x128xf32, #tpu.memory_space<vmem>>, vector<1x128xf32>
    tpu.vector_store %arg8[%c0_2, %c0_3], %2 {strides = array<i32>} : memref<18x128xf32, #tpu.memory_space<vmem>>, vector<1x128xf32>,
    %c17 = arith.constant 17 : index
    %c0_4 = arith.constant 0 : index
    %4 = vector.load %arg8[%c17, %c0_4] : memref<18x128xf32, #tpu.memory_space<vmem>>, vector<1x128xf32>
    tpu.vector_store %arg8[%c17, %c0_4], %2 {strides = array<i32>} : memref<18x128xf32, #tpu.memory_space<vmem>>, vector<1x128xf32>,
    %c1 = arith.constant 1 : index
    %c0_5 = arith.constant 0 : index
    %5 = vector.load %arg8[%c1, %c0_5] : memref<18x128xf32, #tpu.memory_space<vmem>>, vector<16x128xf32>
    tpu.vector_store %arg8[%c1, %c0_5], %1 {strides = array<i32>} : memref<18x128xf32, #tpu.memory_space<vmem>>, vector<16x128xf32>,
    %c1_6 = arith.constant 1 : index
    %6 = memref.load %arg1[%c1_6] : memref<5xf32, #tpu.memory_space<smem>>
    %7 = vector.broadcast %6 : f32 to vector<16x128xf32>
    %8 = arith.mulf %7, %1 : vector<16x128xf32>
    %c0_7 = arith.constant 0 : index
    %c0_8 = arith.constant 0 : index
    %9 = vector.load %arg8[%c0_7, %c0_8] : memref<18x128xf32, #tpu.memory_space<vmem>>, vector<16x128xf32>
    %c2 = arith.constant 2 : index
    %c0_9 = arith.constant 0 : index
    %10 = vector.load %arg8[%c2, %c0_9] : memref<18x128xf32, #tpu.memory_space<vmem>>, vector<16x128xf32>
    %cst_10 = arith.constant 0.000000e+00 : f32
    %11 = vector.broadcast %cst_10 : f32 to vector<16x128xf32>
    %12 = arith.maximumf %9, %11 : vector<16x128xf32>
    %c0_11 = arith.constant 0 : index
    %c0_12 = arith.constant 0 : index
    %c0_13 = arith.constant 0 : index
    %13 = vector.load %arg3[%c0_11, %c0_12, %c0_13] : memref<3x128x128xf32, #tpu.memory_space<vmem>>, vector<1x128x128xf32>
    %14 = vector.shape_cast %13 : vector<1x128x128xf32> to vector<128x128xf32>
    %cst_14 = arith.constant dense<0.000000e+00> : vector<16x128xf32>
    %15 = tpu.matmul %12, %14, %cst_14 {dimension_numbers = #tpu.dot_dimension_numbers<[1], [0], [0], [1], [0, 0, 1, 1], [], []>} : vector<16x128xf32>, vector<128x128xf32>, vector<16x128xf32> -> vector<16x128xf32>
    %16 = arith.addf %8, %15 : vector<16x128xf32>
    %cst_15 = arith.constant 0.000000e+00 : f32
    %17 = vector.broadcast %cst_15 : f32 to vector<16x128xf32>
    %18 = arith.maximumf %1, %17 : vector<16x128xf32>
    %c1_16 = arith.constant 1 : index
    %c0_17 = arith.constant 0 : index
    %c0_18 = arith.constant 0 : index
    %19 = vector.load %arg3[%c1_16, %c0_17, %c0_18] : memref<3x128x128xf32, #tpu.memory_space<vmem>>, vector<1x128x128xf32>
    %20 = vector.shape_cast %19 : vector<1x128x128xf32> to vector<128x128xf32>
    %cst_19 = arith.constant dense<0.000000e+00> : vector<16x128xf32>
    %21 = tpu.matmul %18, %20, %cst_19 {dimension_numbers = #tpu.dot_dimension_numbers<[1], [0], [0], [1], [0, 0, 1, 1], [], []>} : vector<16x128xf32>, vector<128x128xf32>, vector<16x128xf32> -> vector<16x128xf32>
    %22 = arith.addf %16, %21 : vector<16x128xf32>
    %cst_20 = arith.constant 0.000000e+00 : f32
    %23 = vector.broadcast %cst_20 : f32 to vector<16x128xf32>
    %24 = arith.maximumf %10, %23 : vector<16x128xf32>
    %c2_21 = arith.constant 2 : index
    %c0_22 = arith.constant 0 : index
    %c0_23 = arith.constant 0 : index
    %25 = vector.load %arg3[%c2_21, %c0_22, %c0_23] : memref<3x128x128xf32, #tpu.memory_space<vmem>>, vector<1x128x128xf32>
    %26 = vector.shape_cast %25 : vector<1x128x128xf32> to vector<128x128xf32>
    %cst_24 = arith.constant dense<0.000000e+00> : vector<16x128xf32>
    %27 = tpu.matmul %24, %26, %cst_24 {dimension_numbers = #tpu.dot_dimension_numbers<[1], [0], [0], [1], [0, 0, 1, 1], [], []>} : vector<16x128xf32>, vector<128x128xf32>, vector<16x128xf32> -> vector<16x128xf32>
    %28 = arith.addf %22, %27 : vector<16x128xf32>
    %29 = arith.addf %9, %1 : vector<16x128xf32>
    %30 = arith.addf %29, %10 : vector<16x128xf32>
    %c0_25 = arith.constant 0 : index
    %c0_26 = arith.constant 0 : index
    %31 = vector.load %arg4[%c0_25, %c0_26] : memref<128x128xf32, #tpu.memory_space<vmem>>, vector<128x128xf32>
    %cst_27 = arith.constant dense<0.000000e+00> : vector<16x128xf32>
    %32 = tpu.matmul %30, %31, %cst_27 {dimension_numbers = #tpu.dot_dimension_numbers<[1], [0], [0], [1], [0, 0, 1, 1], [], []>} : vector<16x128xf32>, vector<128x128xf32>, vector<16x128xf32> -> vector<16x128xf32>
    %c0_28 = arith.constant 0 : index
    %c0_29 = arith.constant 0 : index
    %33 = vector.load %arg5[%c0_28, %c0_29] : memref<16x128xf32, #tpu.memory_space<vmem>>, vector<16x128xf32>
    %34 = arith.mulf %32, %33 : vector<16x128xf32>
    %35 = arith.addf %28, %34 : vector<16x128xf32>
    %c0_30 = arith.constant 0 : index
    %c0_31 = arith.constant 0 : index
    %36 = vector.load %arg6[%c0_30, %c0_31] : memref<1x128xf32, #tpu.memory_space<vmem>>, vector<1x128xf32>
    %37 = vector.broadcast %36 : vector<1x128xf32> to vector<16x128xf32>
    %38 = arith.addf %35, %37 : vector<16x128xf32>
    %c0_32 = arith.constant 0 : index
    %c0_33 = arith.constant 0 : index
    %c0_34 = arith.constant 0 : index
    %39 = vector.load %arg7[%c0_32, %c0_33, %c0_34] : memref<1x16x128xf32, #tpu.memory_space<vmem>>, vector<1x16x128xf32>
    %40 = vector.shape_cast %39 : vector<1x16x128xf32> to vector<16x128xf32>
    %41 = vector.shape_cast %38 : vector<16x128xf32> to vector<1x16x128xf32>
    tpu.vector_store %arg7[%c0_32, %c0_33, %c0_34], %41 {strides = array<i32>} : memref<1x16x128xf32, #tpu.memory_space<vmem>>, vector<1x16x128xf32>,
    return
  }
  func.func @transform_0(%arg0: i32) -> i32 {
    %c0_i32 = arith.constant 0 : i32
    %c0_i32_0 = arith.constant 0 : i32
    return %c0_i32 : i32
  }
  func.func @transform_1(%arg0: i32) -> (i32, i32, i32) {
    %c0_i32 = arith.constant 0 : i32
    %c0_i32_0 = arith.constant 0 : i32
    %c0_i32_1 = arith.constant 0 : i32
    return %arg0, %c0_i32, %c0_i32_0 : i32, i32, i32
  }
  func.func @transform_2(%arg0: i32) -> (i32, i32, i32) {
    %c0_i32 = arith.constant 0 : i32
    %c0_i32_0 = arith.constant 0 : i32
    %c0_i32_1 = arith.constant 0 : i32
    %c0_i32_2 = arith.constant 0 : i32
    return %c0_i32, %c0_i32_0, %c0_i32_1 : i32, i32, i32
  }
  func.func @transform_3(%arg0: i32) -> (i32, i32) {
    %c0_i32 = arith.constant 0 : i32
    %c0_i32_0 = arith.constant 0 : i32
    %c0_i32_1 = arith.constant 0 : i32
    return %c0_i32, %c0_i32_0 : i32, i32
  }
  func.func @transform_4(%arg0: i32) -> (i32, i32) {
    %c0_i32 = arith.constant 0 : i32
    %c0_i32_0 = arith.constant 0 : i32
    %c0_i32_1 = arith.constant 0 : i32
    return %c0_i32, %c0_i32_0 : i32, i32
  }
  func.func @transform_5(%arg0: i32) -> (i32, i32) {
    %c0_i32 = arith.constant 0 : i32
    %c0_i32_0 = arith.constant 0 : i32
    %c0_i32_1 = arith.constant 0 : i32
    return %c0_i32, %c0_i32_0 : i32, i32
  }
  func.func @transform_6(%arg0: i32) -> (i32, i32, i32) {
    %c0_i32 = arith.constant 0 : i32
    %c0_i32_0 = arith.constant 0 : i32
    %c0_i32_1 = arith.constant 0 : i32
    return %arg0, %c0_i32, %c0_i32_0 : i32, i32, i32
  }
}

</mosaic_0001>

<bundles_post_ra>
// kernel: tpu_custom_call.1
= control target key start
LH: loop header
LB: loop body
LE: loop exit
PB: predicated region body
PF: predicated region fallthrough
CT: control target
= control target key end

     0   :  { %11 = vsyncpa [#allocation6], 0  ;;  %s1690_s0 = inlined_call_operand.hbm [shape: f32[5], index: 0, kind: input, shape index: {}]   ;;  %s1691_s1 = inlined_call_operand.hbm [shape: f32[2,16,128], index: 1, kind: input, shape index: {}]   ;;  %s1692_s2 = inlined_call_operand.hbm [shape: f32[3,128,128], index: 2, kind: input, shape index: {}]   ;;  %s1693_s3 = inlined_call_operand.hbm [shape: f32[128,128], index: 3, kind: input, shape index: {}]   ;;  %s1694_s4 = inlined_call_operand.hbm [shape: f32[16,128], index: 4, kind: input, shape index: {}]   ;;  %s1695_s5 = inlined_call_operand.vmem [shape: f32[1,128], index: 5, kind: input, shape index: {}]   ;;  %s1696_s6 = inlined_call_operand.hbm [shape: f32[2,16,128], index: 6, kind: output, shape index: {}]  }
   0x1   :  { %12 = vsyncpa [#allocation4], 0 }
   0x2   :  { %14 = vsyncpa [#allocation4 + $0x1], 0 }
   0x3   :  { %15 = vsyncpa [#allocation9], 0 }
   0x4   :  { %16 = vsyncpa [#allocation12], 0 }
   0x5   :  { %17 = vsyncpa [#allocation5], 0 }
   0x6   :  { %19 = vsyncpa [#allocation5 + $0x1], 0  ;;  %s1438_s21 = smov 0   ;;  %s1440_s22 = smov 0  }
   0x7   :  { %s1442_s23 = smov 0   ;;  %s1444_s24 = smov 0  }
   0x8 LB: > { %s1459_s25 = sadd.s32 4294967295, %s1390_s24   ;;  %s867_s26 = sadd.s32 4294967294, %s1390_s24   ;;  %s1390_s24 = sphi %s1444_s24, %s1725_s24   ;;  %s1386_s23 = sphi %s1442_s23, %s1724_s23   ;;  %s1382_s22 = sphi %s1440_s22, %s1723_s22   ;;  %s1378_s21 = sphi %s1438_s21, %s1722_s21  }
   0x9   : > { %p66_p0 = scmp.ne.s32.totalorder %s1382_s22, %s1378_s21  ;;  %p1697_p1 = scmp.eq.s32.totalorder %s1459_s25, 0 }
   0xa   : > { %p174_p2 = scmp.eq.s32.totalorder %s1459_s25, 1  ;;  %p180_p3 = scmp.eq.s32.totalorder %s867_s26, 1 }
   0xb   : > { %p1468_p4 = por %p1697_p1, %p66_p0  ;;  %p868_p5 = scmp.ge.s32.totalorder %s1390_s24, 1 }
   0xc   : > { %p1473_p6 = por %p180_p3, %p66_p0  ;;  %p187_p7 = scmp.lt.s32.totalorder %s1390_s24, 3 }
   0xd   : > { %s1703_s27 = scalar_select %p1468_p4, 1, 0 }
   0xe   : > { %s1704_s28 = scalar_select %p1473_p6, 1, 0 }
   0xf   : > { %p1478_p8 = pnand %p868_p5, %p187_p7  ;;  %s1392_s30 = smov [#allocation8]  }
  0x10   : > { %s208_s7 = sshll.u32 %s1392_s30, 4  ;;  %s1393_s9 = smov [#allocation10]   ;;  %s209_s7 = int_to_ptr.vmem [resolvable:$true] %s208_s7 }
  0x11   : > { %s1705_s29 = scalar_select %p1478_p8, 1, 0 }
  0x12   : > { %p1125_p9 = pneg %p1478_p8  ;;  %s221_s10 = sshll.u32 %s1393_s9, 4  ;;  %s222_s10 = int_to_ptr.vmem [resolvable:$true] %s221_s10 }
  0x13   : > { %s1208_s11 = scalar_lea.vmem %s209_s7, 6144  ;;  %p1216_p5 = scmp.lt.s32.totalorder %s209_s7, %s209_s7 }
  0x14   : > { %p1487_p11 = pnand %p1125_p9, %p1697_p1  ;;  %p1209_p13 = scmp.ne.s32.totalorder %s209_s7, %s1208_s11 }
  0x15   : > { %p1217_p7 = scmp.lt.s32.totalorder %s1208_s11, %s1208_s11 }
  0x16   : > { %p1199_p12 = pneg %p1487_p11 }
  0x17   : > { %p1218_p10 = por %p1217_p7, %p1216_p5 }
  0x18   : > { %p1211_p0 = pnand %p1209_p13, %p1199_p12 }
  0x1a   : > { %p1212_p3 = pneg %p1211_p0 }
  0x1c   : > { %p1219_p9 = pnand %p1218_p10, %p1212_p3 }
  0x1e   : > { %1222 = shalt.err (!%p1219_p9)
}
  0x1f   : > { %s1698_s12 = smov 128   ;;  %s1699_s13 = smov 8  }
  0x20   : > { %1131 = dma.hbm_to_vmem [thread:$0]  (!%p1487_p11), %s1692_s2, 6144, %s209_s7, [#allocation9], %s1698_s12, %s1698_s12, %s1699_s13  }
  0x21   : > { %s1396_s16 = smov [#allocation3]   ;;  %s1245_s19 = scalar_lea.vmem %s222_s10, 2048 }
  0x22   : > { %1128 = dma.hbm_to_smem (!%p1487_p11), %s1690_s0, 16, %s1396_s16, [#allocation6]  }
  0x23   : > { %p1246_p10 = scmp.ne.s32.totalorder %s222_s10, %s1245_s19  ;;  %p1253_p3 = scmp.lt.s32.totalorder %s222_s10, %s222_s10 }
  0x24   : > { %p1254_p5 = scmp.lt.s32.totalorder %s1245_s19, %s1245_s19 }
  0x25   : > { %p1248_p13 = pnand %p1246_p10, %p1199_p12 }
  0x26   : > { %p1255_p7 = por %p1254_p5, %p1253_p3 }
  0x27   : > { %p1249_p0 = pneg %p1248_p13 }
  0x29   : > { %p1256_p9 = pnand %p1255_p7, %p1249_p0 }
  0x2b   : > { %1259 = shalt.err (!%p1256_p9)
}
  0x2c   : > { %1134 = dma.hbm_to_vmem [thread:$0]  (!%p1487_p11), %s1693_s3, 2048, %s222_s10, [#allocation9], %s1698_s12, %s1698_s12, %s1699_s13  }
  0x2d   : > { %s1397_s30 = smov [#allocation11]  }
  0x2e   : > { %s234_s7 = sshll.u32 %s1397_s30, 4  ;;  %s235_s7 = int_to_ptr.vmem [resolvable:$true] %s234_s7 }
  0x2f   : > { %s1271_s9 = scalar_lea.vmem %s235_s7, 256  ;;  %p1279_p3 = scmp.lt.s32.totalorder %s235_s7, %s235_s7 }
  0x30   : > { %p1272_p10 = scmp.ne.s32.totalorder %s235_s7, %s1271_s9  ;;  %p1280_p5 = scmp.lt.s32.totalorder %s1271_s9, %s1271_s9 }
  0x32   : > { %p1274_p13 = pnand %p1272_p10, %p1199_p12  ;;  %p1281_p7 = por %p1280_p5, %p1279_p3 }
  0x34   : > { %p1275_p0 = pneg %p1274_p13 }
  0x36   : > { %p1282_p9 = pnand %p1281_p7, %p1275_p0 }
  0x38   : > { %1285 = shalt.err (!%p1282_p9)
}
  0x39   : > { %1137 = dma.hbm_to_vmem [thread:$0]  (!%p1487_p11), %s1694_s4, 256, %s235_s7, [#allocation12], %s1698_s12, %s1698_s12, %s1699_s13  }
  0x3a   : > { %s1532_s14 = sadd.s32 1, %s1390_s24   ;;  %s53_s8 = sadd.s32 1, %s1386_s23 }
  0x3b   : > { %s50_s15 = ssub.s32 %s1390_s24, %s1532_s14  ;;  %p60_p12 = scmp.ne.s32.totalorder %s1386_s23, %s1382_s22 }
  0x3c   : > { %p51_p10 = scmp.eq.s32.totalorder %s50_s15, 0  ;;  %p61_p13 = scmp.eq.s32.totalorder %s1390_s24, 0 }
  0x3d   : > { %p1542_p0 = por %p174_p2, %p60_p12  ;;  %p1150_p3 = scmp.lt.s32.totalorder %s1390_s24, 2 }
  0x3e   : > { %s1548_s17 = scalar_select %p51_p10, %s1386_s23, %s53_s8  }
  0x3f   : > { %s1707_s16 = scalar_select %p1542_p0, 1, 0 }
  0x40   : > { %p62_p5 = por %p61_p13, %p60_p12  ;;  %s251_s18 = sand.u32 1, %s1386_s23  }
  0x41   : > { %s874_s19 = sshll.u32 %s251_s18, 4  ;;  %s891_s20 = sshll.u32 %s1390_s24, 8 }
  0x42   : > { %s1555_s7 = scalar_lea.hbm %s1691_s1, %s891_s20  ;;  %s255_s9 = scalar_lea.vmem [#allocation7], %s874_s19 }
  0x43   : > { %s262_s10 = sshll.u32 %s255_s9, 4  ;;  %p1559_p2 = pnand %p1150_p3, %p62_p5  ;;  %s1557_s10 = int_to_ptr.vmem [resolvable:$true] %s262_s10 }
  0x44   : > { %s1563_s8 = scalar_lea.sflag [#allocation4], %s251_s18  ;;  %s1286_s15 = scalar_lea.hbm %s1555_s7, 256 }
  0x45   : > { %p1287_p11 = scmp.ne.s32.totalorder %s1555_s7, %s1286_s15  ;;  %p1288_p7 = pneg %p1559_p2 }
  0x46   : > { %s1291_s19 = scalar_lea.hbm %s1691_s1, 512  ;;  %p1292_p10 = scmp.lt.s32.totalorder %s1555_s7, %s1691_s1 }
  0x47   : > { %p1289_p9 = pnand %p1288_p7, %p1287_p11  ;;  %p1293_p13 = scmp.lt.s32.totalorder %s1291_s19, %s1286_s15 }
  0x49   : > { %p1290_p12 = pneg %p1289_p9  ;;  %p1294_p3 = por %p1293_p13, %p1292_p10 }
  0x4b   : > { %p1295_p5 = pnand %p1294_p3, %p1290_p12 }
  0x4d   : > { %1298 = shalt.err (!%p1295_p5)
}
  0x4e   : > { %s1299_s18 = scalar_lea.vmem %s1557_s10, 256  ;;  %s1398_s12 = smov [#allocation7]  }
  0x4f   : > { %p1300_p1 = scmp.ne.s32.totalorder %s1557_s10, %s1299_s18  ;;  %s1304_s13 = sshll.u32 %s1398_s12, 4  ;;  %s1305_s13 = int_to_ptr.vmem [resolvable:$false] %s1304_s13 }
  0x50   : > { %s1306_s20 = scalar_lea.vmem %s1305_s13, 512  ;;  %p1307_p9 = scmp.lt.s32.totalorder %s1557_s10, %s1305_s13 }
  0x51   : > { %p1302_p6 = pnand %p1300_p1, %p1288_p7  ;;  %p1308_p0 = scmp.lt.s32.totalorder %s1306_s20, %s1299_s18 }
  0x53   : > { %p1303_p11 = pneg %p1302_p6  ;;  %p1309_p4 = por %p1308_p0, %p1307_p9 }
  0x55   : > { %p1310_p8 = pnand %p1309_p4, %p1303_p11 }
  0x57   : > { %1313 = shalt.err (!%p1310_p8)
}
  0x58   : > { %s1709_s15 = smov 8   ;;  %s1710_s26 = smov 128  }
  0x59   : > { %1141 = dma.hbm_to_vmem [thread:$0]  (!%p1559_p2), %s1555_s7, 256, %s1557_s10, %s1563_s8, %s1710_s26, %s1710_s26, %s1709_s15  }
  0x5a   : > { %p1711_p1 = scmp.ne.s32.totalorder %s1705_s29, 0 }
  0x5b   : > { %p1712_p6 = scmp.eq.s32.totalorder (!%p1711_p1), %s1459_s25, 0 }
  0x5c   : > { %274 = sbr.rel (%p1711_p1) target bundleno = 394 (0x18a), region = 44 }
  0x61   : > { %1357 = dma.done.wait (%p1712_p6), [#allocation6], 16   ;;  %p1713_p7 = pmov %p1712_p6 }
  0x62   : > { %s1594_s12 = sand.u32 1, %s1382_s22   ;;  %p1714_p4 = scmp.ne.s32.totalorder %s1703_s27, 0 }
  0x63   : > { %1359 = vsyncadd (%p1713_p7), [#allocation6], 4294967280  ;;  %s879_s13 = sshll.u32 %s1594_s12, 4  ;;  %s281_s11 = scalar_lea.sflag [#allocation4], %s1594_s12 }
  0x64   : > { %s1600_s7 = scalar_lea.vmem [#allocation7], %s879_s13 }
  0x65   : > { %1361 = dma.done.wait (%p1714_p4), %s281_s11, 256  }
  0x66   : > { %1363 = vsyncadd (%p1714_p4), %s281_s11, 4294967040  ;;  %p1715_p8 = pmov %p1712_p6 }
  0x67   : > { %p1716_p0 = pmov %p1712_p6 }
  0x68   : > { %1365 = dma.done.wait (%p1715_p8), [#allocation9], 8192  }
  0x69   : > { %1367 = vsyncadd (%p1716_p0), [#allocation9], 4294959104  ;;  %p1717_p2 = pmov %p1716_p0 }
  0x6a   : > { %p1718_p12 = pmov %p1716_p0 }
  0x6b   : > { %1369 = dma.done.wait (%p1717_p2), [#allocation12], 256  }
  0x6c   : > { %1371 = vsyncadd (%p1718_p12), [#allocation12], 4294967040 }
  0x6d   : > { %301 = sfence }
  0x6e   : > { %v357_v0 = vld [vmem:[#allocation8 + $0x78] sm:$0xff]  ;;  %v356_v2 = vld [vmem:[#allocation8 + $0x70] sm:$0xff]  ;;  %v1399_v4 = vmov 0.0   ;;  %v355_v5 = vld [vmem:[#allocation8 + $0x68] sm:$0xff]  ;;  %s884_s27 = sld [smem:[#allocation3 + $0x1]]  ;;  %s325_s8 = scalar_lea.vmem [#allocation13], %s879_s13 }
  0x6f   : > { %v453_v1 = vld [vmem:[#allocation8 + $0xf8] sm:$0xff]  ;;  %965 = vmatprep.subr.mxu0 %v357_v0  ;;  %v452_v3 = vld [vmem:[#allocation8 + $0xf0] sm:$0xff]  ;;  %328 = vst [vmem:[#allocation2] sm:$0x1] %v1399_v4  ;;  %329 = vst [vmem:[#allocation2 + $0x11] sm:$0x1] %v1399_v4 }
  0x70   : > { %1000 = vmatprep.subr.mxu1 %v453_v1  ;;  %966 = vmatpush3.msra.mxu0 %v357_v0  ;;  %v451_v6 = vld [vmem:[#allocation8 + $0xe8] sm:$0xff]  ;;  %v354_v7 = vld [vmem:[#allocation8 + $0x60] sm:$0xff]  ;;  %v353_v9 = vld [vmem:[#allocation8 + $0x58] sm:$0xff]  ;;  %s753_s19 = sshll.u32 %s325_s8, 4  ;;  %s892_s30 = sshll.u32 %s1459_s25, 8  ;;  %s1642_s19 = int_to_ptr.vmem [resolvable:$true] %s753_s19 }
  0x71   : > { %1001 = vmatpush3.msra.mxu1 %v453_v1  ;;  %967 = vmatprep.subr.mxu0 %v356_v2  ;;  %v450_v8 = vld [vmem:[#allocation8 + $0xe0] sm:$0xff]  ;;  %v449_v10 = vld [vmem:[#allocation8 + $0xd8] sm:$0xff]  ;;  %v352_v11 = vld [vmem:[#allocation8 + $0x50] sm:$0xff]  ;;  %s1647_s20 = scalar_lea.hbm %s1696_s6, %s892_s30  ;;  %s740_s15 = scalar_lea.sflag [#allocation5], %s1594_s12 }
  0x72   : > { %1002 = vmatprep.subr.mxu1 %v452_v3  ;;  %968 = vmatpush3.msra.mxu0 %v356_v2  ;;  %v448_v12 = vld [vmem:[#allocation8 + $0xd0] sm:$0xff]  ;;  %v351_v13 = vld [vmem:[#allocation8 + $0x48] sm:$0xff]  ;;  %v350_v17 = vld [vmem:[#allocation8 + $0x40] sm:$0xff]  ;;  %s1314_s26 = scalar_lea.vmem %s1642_s19, 256  ;;  %p1719_p13 = scmp.ne.s32.totalorder %s1707_s16, 0 }
  0x73   : > { %1003 = vmatpush3.msra.mxu1 %v452_v3  ;;  %969 = vmatprep.subr.mxu0 %v355_v5  ;;  %v447_v14 = vld [vmem:[#allocation8 + $0xc8] sm:$0xff]  ;;  %v1615_v15 = vld [vmem:[%s1600_s7] sm:$0xff]  ;;  %v349_v19 = vld [vmem:[#allocation8 + $0x38] sm:$0xff]  ;;  %p1315_p10 = scmp.ne.s32.totalorder %s1642_s19, %s1314_s26  ;;  %s1400_s25 = smov [#allocation13]  }
  0x74   : > { %1004 = vmatprep.subr.mxu1 %v451_v6  ;;  %970 = vmatpush3.msra.mxu0 %v355_v5  ;;  %330 = vst [vmem:[#allocation2 + $0x1] sm:$0xff] %v1615_v15  ;;  %v1619_v16 = vld [vmem:[%s1600_s7 + $0x8] sm:$0xff]  ;;  %v446_v18 = vld [vmem:[#allocation8 + $0xc0] sm:$0xff]  ;;  %v348_v21 = vld [vmem:[#allocation8 + $0x30] sm:$0xff]  ;;  %v435_v38 = vmax.f32 %v1615_v15, 0.0  ;;  %s1318_s13 = sshll.u32 %s1400_s25, 4  ;;  %s1319_s13 = int_to_ptr.vmem [resolvable:$false] %s1318_s13 }
  0x75   : > { %1005 = vmatpush3.msra.mxu1 %v451_v6  ;;  %971 = vmatprep.subr.mxu0 %v354_v7  ;;  %331 = vst [vmem:[#allocation2 + $0x9] sm:$0xff] %v1619_v16  ;;  %v445_v20 = vld [vmem:[#allocation8 + $0xb8] sm:$0xff]  ;;  %v444_v22 = vld [vmem:[#allocation8 + $0xb0] sm:$0xff]  ;;  %v347_v23 = vld [vmem:[#allocation8 + $0x28] sm:$0xff]  ;;  %v436_v40 = vmax.f32 %v1619_v16, 0.0  ;;  %p1316_p3 = pnand %p1315_p10, %p1719_p13  ;;  %s1320_s11 = scalar_lea.vmem %s1319_s13, 512 }
  0x76   : > { %1006 = vmatprep.subr.mxu1 %v450_v8  ;;  %972 = vmatpush3.msra.mxu0 %v354_v7  ;;  %v443_v24 = vld [vmem:[#allocation8 + $0xa8] sm:$0xff]  ;;  %v346_v25 = vld [vmem:[#allocation8 + $0x20] sm:$0xff]  ;;  %v345_v27 = vld [vmem:[#allocation8 + $0x18] sm:$0xff]  ;;  %p1321_p11 = scmp.lt.s32.totalorder %s1642_s19, %s1319_s13  ;;  %p1322_p9 = scmp.lt.s32.totalorder %s1320_s11, %s1314_s26 }
  0x77   : > { %1007 = vmatpush3.msra.mxu1 %v450_v8  ;;  %973 = vmatprep.subr.mxu0 %v353_v9  ;;  %v442_v26 = vld [vmem:[#allocation8 + $0xa0] sm:$0xff]  ;;  %v441_v28 = vld [vmem:[#allocation8 + $0x98] sm:$0xff]  ;;  %v344_v29 = vld [vmem:[#allocation8 + $0x10] sm:$0xff]  ;;  %p1317_p5 = pneg %p1316_p3 }
  0x78   : > { %1008 = vmatprep.subr.mxu1 %v449_v10  ;;  %974 = vmatpush3.msra.mxu0 %v353_v9  ;;  %v440_v30 = vld [vmem:[#allocation8 + $0x90] sm:$0xff]  ;;  %v343_v32 = vld [vmem:[#allocation8 + $0x8] sm:$0xff]  ;;  %v342_v35 = vld [vmem:[#allocation8] sm:$0xff]  ;;  %p1323_p1 = por %p1322_p9, %p1321_p11 }
  0x79   : > { %1009 = vmatpush3.msra.mxu1 %v449_v10  ;;  %975 = vmatprep.subr.mxu0 %v352_v11  ;;  %v439_v33 = vld [vmem:[#allocation8 + $0x88] sm:$0xff]  ;;  %v438_v36 = vld [vmem:[#allocation8 + $0x80] sm:$0xff]  ;;  %v549_v41 = vld [vmem:[#allocation8 + $0x178] sm:$0xff] }
  0x7a   : > { %1010 = vmatprep.subr.mxu1 %v448_v12  ;;  %976 = vmatpush3.msra.mxu0 %v352_v11  ;;  %v646_v42 = vld [vmem:[#allocation10 + $0x78] sm:$0xff]  ;;  %v548_v43 = vld [vmem:[#allocation8 + $0x170] sm:$0xff]  ;;  %v547_v45 = vld [vmem:[#allocation8 + $0x168] sm:$0xff]  ;;  %p1324_p6 = pnand %p1323_p1, %p1317_p5 }
  0x7b   : > { %1011 = vmatpush3.msra.mxu1 %v448_v12  ;;  %977 = vmatprep.subr.mxu0 %v351_v13  ;;  %v1622_v31 = vld [vmem:[#allocation2] sm:$0xff]  ;;  %v645_v44 = vld [vmem:[#allocation10 + $0x70] sm:$0xff]  ;;  %v546_v47 = vld [vmem:[#allocation8 + $0x160] sm:$0xff] }
  0x7c   : > { %1012 = vmatprep.subr.mxu1 %v447_v14  ;;  %978 = vmatpush3.msra.mxu0 %v351_v13  ;;  %v1624_v34 = vld [vmem:[#allocation2 + $0x8] sm:$0xff]  ;;  %v340_v37 = vmax.f32 %v1622_v31, 0.0  ;;  %v644_v46 = vld [vmem:[#allocation10 + $0x68] sm:$0xff]  ;;  %v643_v48 = vld [vmem:[#allocation10 + $0x60] sm:$0xff]  ;;  %v627_v5 = vadd.f32 %v1622_v31, %v1615_v15 }
  0x7d   : > { %1013 = vmatpush3.msra.mxu1 %v447_v14  ;;  %979 = vmatprep.subr.mxu0 %v350_v17  ;;  %v341_v39 = vmax.f32 %v1624_v34, 0.0  ;;  %v545_v49 = vld [vmem:[#allocation8 + $0x158] sm:$0xff]  ;;  %v544_v51 = vld [vmem:[#allocation8 + $0x150] sm:$0xff]  ;;  %v543_v53 = vld [vmem:[#allocation8 + $0x148] sm:$0xff]  ;;  %v628_v7 = vadd.f32 %v1624_v34, %v1619_v16 }
  0x7e   : > { %1014 = vmatprep.subr.mxu1 %v446_v18  ;;  %980 = vmatpush3.msra.mxu0 %v350_v17  ;;  %v642_v50 = vld [vmem:[#allocation10 + $0x58] sm:$0xff]  ;;  %v641_v52 = vld [vmem:[#allocation10 + $0x50] sm:$0xff]  ;;  %v640_v54 = vld [vmem:[#allocation10 + $0x48] sm:$0xff] }
  0x7f   : > { %1015 = vmatpush3.msra.mxu1 %v446_v18  ;;  %981 = vmatprep.subr.mxu0 %v349_v19  ;;  %v542_v55 = vld [vmem:[#allocation8 + $0x140] sm:$0xff]  ;;  %v541_v57 = vld [vmem:[#allocation8 + $0x138] sm:$0xff]  ;;  %v540_v59 = vld [vmem:[#allocation8 + $0x130] sm:$0xff] }
  0x80   : > { %1016 = vmatprep.subr.mxu1 %v445_v20  ;;  %982 = vmatpush3.msra.mxu0 %v349_v19  ;;  %v639_v56 = vld [vmem:[#allocation10 + $0x40] sm:$0xff]  ;;  %v638_v58 = vld [vmem:[#allocation10 + $0x38] sm:$0xff]  ;;  %v637_v60 = vld [vmem:[#allocation10 + $0x30] sm:$0xff]  ;;  %v333_v19 = vstv %s884_s27 }
  0x81   : > { %1017 = vmatpush3.msra.mxu1 %v445_v20  ;;  %983 = vmatprep.subr.mxu0 %v348_v21  ;;  %v539_v61 = vld [vmem:[#allocation8 + $0x128] sm:$0xff]  ;;  %v538_v63 = vld [vmem:[#allocation8 + $0x120] sm:$0xff]  ;;  %v537_v1 = vld [vmem:[#allocation8 + $0x118] sm:$0xff] }
  0x82   : > { %1018 = vmatprep.subr.mxu1 %v444_v22  ;;  %984 = vmatpush3.msra.mxu0 %v348_v21  ;;  %v636_v62 = vld [vmem:[#allocation10 + $0x28] sm:$0xff]  ;;  %v635_v0 = vld [vmem:[#allocation10 + $0x20] sm:$0xff]  ;;  %v634_v2 = vld [vmem:[#allocation10 + $0x18] sm:$0xff]  ;;  %v335_v21 = vmul.f32 %v333_v19, %v1619_v16 }
  0x83   : > { %1019 = vmatpush3.msra.mxu1 %v444_v22  ;;  %985 = vmatprep.subr.mxu0 %v347_v23  ;;  %v536_v3 = vld [vmem:[#allocation8 + $0x110] sm:$0xff]  ;;  %v535_v8 = vld [vmem:[#allocation8 + $0x108] sm:$0xff]  ;;  %v534_v11 = vld [vmem:[#allocation8 + $0x100] sm:$0xff]  ;;  %v334_v22 = vmul.f32 %v333_v19, %v1615_v15 }
  0x84   : > { %1020 = vmatprep.subr.mxu1 %v443_v24  ;;  %986 = vmatpush3.msra.mxu0 %v347_v23  ;;  %v633_v4 = vld [vmem:[#allocation10 + $0x10] sm:$0xff]  ;;  %v632_v9 = vld [vmem:[#allocation10 + $0x8] sm:$0xff]  ;;  %v631_v12 = vld [vmem:[#allocation10] sm:$0xff] }
  0x85   : > { %1021 = vmatpush3.msra.mxu1 %v443_v24  ;;  %987 = vmatprep.subr.mxu0 %v346_v25  ;;  %v338_v6 = vld [vmem:[#allocation2 + $0x2] sm:$0xff]  ;;  %v339_v10 = vld [vmem:[#allocation2 + $0xa] sm:$0xff]  ;;  %v885_v16 = vld [vmem:[%s1695_s5] ss:$0 sm:$0xff] }
  0x86   : > { %1022 = vmatprep.subr.mxu1 %v442_v26  ;;  %988 = vmatpush3.msra.mxu0 %v346_v25  ;;  %v531_v13 = vmax.f32 %v338_v6, 0.0  ;;  %v629_v14 = vadd.f32 %v627_v5, %v338_v6  ;;  %v532_v17 = vmax.f32 %v339_v10, 0.0  ;;  %v630_v18 = vadd.f32 %v628_v7, %v339_v10 }
  0x87   : > { %1023 = vmatpush3.msra.mxu1 %v442_v26  ;;  %989 = vmatprep.subr.mxu0 %v345_v27 }
  0x88   : > { %1024 = vmatprep.subr.mxu1 %v441_v28  ;;  %990 = vmatpush3.msra.mxu0 %v345_v27 }
  0x89   : > { %1025 = vmatpush3.msra.mxu1 %v441_v28  ;;  %991 = vmatprep.subr.mxu0 %v344_v29  ;;  %v723_v28 = vld [vmem:[#allocation11 + $0x8] sm:$0xff] }
  0x8a   : > { %1026 = vmatprep.subr.mxu1 %v440_v30  ;;  %992 = vmatpush3.msra.mxu0 %v344_v29 }
  0x8b   : > { %1027 = vmatpush3.msra.mxu1 %v440_v30  ;;  %993 = vmatprep.subr.mxu0 %v343_v32 }
  0x8c   : > { %1028 = vmatprep.subr.mxu1 %v439_v33  ;;  %994 = vmatpush3.msra.mxu0 %v343_v32  ;;  %v722_v32 = vld [vmem:[#allocation11] sm:$0xff] }
  0x8d   : > { %1029 = vmatpush3.msra.mxu1 %v439_v33  ;;  %995 = vmatprep.subr.mxu0 %v342_v35 }
  0x8e   : > { %1030 = vmatprep.subr.mxu1 %v438_v36  ;;  %996 = vmatpush3.msra.mxu0 %v342_v35 }
  0x8f   : > { %997 = vmatprep.mubr.f32.mxu0 %v340_v37  ;;  %1031 = vmatpush3.msra.mxu1 %v438_v36 }
  0x90   : > { %1032 = vmatprep.mubr.f32.mxu1 %v435_v38  ;;  %998 = vmatmul.mubr.f32.vlgmr.msra.gmra.mxu0 %v341_v39 }
  0x91   : > { %1033 = vmatmul.mubr.f32.vlgmr.msra.gmra.mxu1 %v436_v40  ;;  %1035 = vmatprep.subr.mxu0 %v549_v41 }
  0x92   : > { %1070 = vmatprep.subr.mxu1 %v646_v42  ;;  %1036 = vmatpush3.msra.mxu0 %v549_v41 }
  0x93   : > { %1071 = vmatpush3.msra.mxu1 %v646_v42  ;;  %1037 = vmatprep.subr.mxu0 %v548_v43 }
  0x94   : > { %1072 = vmatprep.subr.mxu1 %v645_v44  ;;  %1038 = vmatpush3.msra.mxu0 %v548_v43 }
  0x95   : > { %1073 = vmatpush3.msra.mxu1 %v645_v44  ;;  %1039 = vmatprep.subr.mxu0 %v547_v45 }
  0x96   : > { %1074 = vmatprep.subr.mxu1 %v644_v46  ;;  %1040 = vmatpush3.msra.mxu0 %v547_v45 }
  0x97   : > { %1075 = vmatpush3.msra.mxu1 %v644_v46  ;;  %1041 = vmatprep.subr.mxu0 %v546_v47 }
  0x98   : > { %1076 = vmatprep.subr.mxu1 %v643_v48  ;;  %1042 = vmatpush3.msra.mxu0 %v546_v47 }
  0x99   : > { %1077 = vmatpush3.msra.mxu1 %v643_v48  ;;  %1043 = vmatprep.subr.mxu0 %v545_v49 }
  0x9a   : > { %1078 = vmatprep.subr.mxu1 %v642_v50  ;;  %1044 = vmatpush3.msra.mxu0 %v545_v49 }
  0x9b   : > { %1079 = vmatpush3.msra.mxu1 %v642_v50  ;;  %1045 = vmatprep.subr.mxu0 %v544_v51 }
  0x9c   : > { %1080 = vmatprep.subr.mxu1 %v641_v52  ;;  %1046 = vmatpush3.msra.mxu0 %v544_v51 }
  0x9d   : > { %1081 = vmatpush3.msra.mxu1 %v641_v52  ;;  %1047 = vmatprep.subr.mxu0 %v543_v53 }
  0x9e   : > { %1082 = vmatprep.subr.mxu1 %v640_v54  ;;  %1048 = vmatpush3.msra.mxu0 %v543_v53 }
  0x9f   : > { %1083 = vmatpush3.msra.mxu1 %v640_v54  ;;  %1049 = vmatprep.subr.mxu0 %v542_v55 }
  0xa0   : > { %1084 = vmatprep.subr.mxu1 %v639_v56  ;;  %1050 = vmatpush3.msra.mxu0 %v542_v55 }
  0xa1   : > { %1085 = vmatpush3.msra.mxu1 %v639_v56  ;;  %1051 = vmatprep.subr.mxu0 %v541_v57 }
  0xa2   : > { %1086 = vmatprep.subr.mxu1 %v638_v58  ;;  %1052 = vmatpush3.msra.mxu0 %v541_v57 }
  0xa3   : > { %1087 = vmatpush3.msra.mxu1 %v638_v58  ;;  %1053 = vmatprep.subr.mxu0 %v540_v59 }
  0xa4   : > { %1088 = vmatprep.subr.mxu1 %v637_v60  ;;  %1054 = vmatpush3.msra.mxu0 %v540_v59 }
  0xa5   : > { %1089 = vmatpush3.msra.mxu1 %v637_v60  ;;  %1055 = vmatprep.subr.mxu0 %v539_v61 }
  0xa6   : > { %1090 = vmatprep.subr.mxu1 %v636_v62  ;;  %1056 = vmatpush3.msra.mxu0 %v539_v61 }
  0xa7   : > { %1091 = vmatpush3.msra.mxu1 %v636_v62  ;;  %1057 = vmatprep.subr.mxu0 %v538_v63 }
  0xa8   : > { %1092 = vmatprep.subr.mxu1 %v635_v0  ;;  %1058 = vmatpush3.msra.mxu0 %v538_v63 }
  0xa9   : > { %1093 = vmatpush3.msra.mxu1 %v635_v0  ;;  %1059 = vmatprep.subr.mxu0 %v537_v1 }
  0xaa   : > { %1094 = vmatprep.subr.mxu1 %v634_v2  ;;  %1060 = vmatpush3.msra.mxu0 %v537_v1 }
  0xab   : > { %1095 = vmatpush3.msra.mxu1 %v634_v2  ;;  %1061 = vmatprep.subr.mxu0 %v536_v3 }
  0xac   : > { %1096 = vmatprep.subr.mxu1 %v633_v4  ;;  %1062 = vmatpush3.msra.mxu0 %v536_v3 }
  0xad   : > { %1097 = vmatpush3.msra.mxu1 %v633_v4  ;;  %1063 = vmatprep.subr.mxu0 %v535_v8 }
  0xae   : > { %1098 = vmatprep.subr.mxu1 %v632_v9  ;;  %1064 = vmatpush3.msra.mxu0 %v535_v8 }
  0xaf   : > { %1099 = vmatpush3.msra.mxu1 %v632_v9  ;;  %1065 = vmatprep.subr.mxu0 %v534_v11 }
  0xb0   : > { %1100 = vmatprep.subr.mxu1 %v631_v12  ;;  %1066 = vmatpush3.msra.mxu0 %v534_v11 }
  0xb1   : > { %1067 = vmatprep.mubr.f32.mxu0 %v531_v13  ;;  %1101 = vmatpush3.msra.mxu1 %v631_v12 }
  0xb2   : > { %1102 = vmatprep.mubr.f32.mxu1 %v629_v14  ;;  %1068 = vmatmul.mubr.f32.vlgmr.msra.gmra.mxu0 %v532_v17 }
  0xb3   : > { %1103 = vmatmul.mubr.f32.vlgmr.msra.gmra.mxu1 %v630_v18 }
 0x150   : > { %v999_v20 = vpop.f32.mrf.mxu0 }
 0x151   : > { %v1034_v23 = vpop.f32.mrf.mxu1  ;;  %v434_v25 = vadd.f32 %v999_v20, %v335_v21 }
 0x152   : > { %v424_v24 = vpop.f32.mrf.mxu0 }
 0x153   : > { %v433_v26 = vadd.f32 %v424_v24, %v334_v22  ;;  %v520_v27 = vpop.f32.mrf.mxu1  ;;  %v530_v29 = vadd.f32 %v1034_v23, %v434_v25 }
 0x155   : > { %v529_v33 = vadd.f32 %v520_v27, %v433_v26 }
 0x172   : > { %v1069_v30 = vpop.f32.mrf.mxu0 }
 0x173   : > { %v1104_v31 = vpop.f32.mrf.mxu1  ;;  %v626_v34 = vadd.f32 %v1069_v30, %v530_v29 }
 0x174   : > { %v725_v35 = vmul.f32 %v1104_v31, %v723_v28  ;;  %v616_v15 = vpop.f32.mrf.mxu0 }
 0x175   : > { %v713_v36 = vpop.f32.mrf.mxu1  ;;  %v625_v38 = vadd.f32 %v616_v15, %v529_v33 }
 0x176   : > { %v727_v37 = vadd.f32 %v725_v35, %v626_v34  ;;  %v724_v39 = vmul.f32 %v722_v32, %v713_v36 }
 0x178   : > { %v736_v40 = vadd.f32 %v885_v16, %v727_v37  ;;  %v726_v41 = vadd.f32 %v724_v39, %v625_v38 }
 0x17a   : > { %738 = vst [vmem:[%s325_s8 + $0x8] sm:$0xff] %v736_v40  ;;  %v735_v42 = vadd.f32 %v885_v16, %v726_v41 }
 0x17c   : > { %737 = vst [vmem:[%s325_s8] sm:$0xff] %v735_v42 }
 0x17d   : > { %1327 = shalt.err (!%p1324_p6)
}
 0x17e   : > { %s1328_s7 = scalar_lea.hbm %s1647_s20, 256  ;;  %s1332_s10 = scalar_lea.hbm %s1696_s6, 512 }
 0x17f   : > { %p1329_p7 = scmp.ne.s32.totalorder %s1647_s20, %s1328_s7  ;;  %p1333_p0 = scmp.lt.s32.totalorder %s1647_s20, %s1696_s6 }
 0x180   : > { %p1334_p2 = scmp.lt.s32.totalorder %s1332_s10, %s1328_s7 }
 0x181   : > { %p1330_p4 = pnand %p1329_p7, %p1719_p13 }
 0x182   : > { %p1335_p12 = por %p1334_p2, %p1333_p0 }
 0x183   : > { %p1331_p8 = pneg %p1330_p4 }
 0x185   : > { %p1336_p10 = pnand %p1335_p12, %p1331_p8 }
 0x187   : > { %1339 = shalt.err (!%p1336_p10)
}
 0x188   : > { %s1401_s9 = smov 128   ;;  %s1402_s18 = smov 8  }
 0x189   : > { %1123 = dma.vmem_to_hbm [thread:$0]  (%p1719_p13), %s1642_s19, 256, %s1647_s20, %s740_s15, %s1401_s9, %s1401_s9, %s1402_s18  }
 0x18a PF: > { %s768_s26 = sand.u32 1, %s1378_s21   ;;  %p1720_p3 = scmp.ne.s32.totalorder %s1704_s28, 0 }
 0x18b   : > { %p1721_p5 = scmp.ge.s32.totalorder %s1390_s24, 2  ;;  %s769_s25 = scalar_lea.sflag [#allocation5], %s768_s26 }
 0x18d   : > { %p1143_p11 = pnand %p1721_p5, %p1720_p3 }
 0x18f   : > { %p1144_p9 = pneg %p1143_p11 }
 0x191   : > { %1373 = dma.done.wait (%p1144_p9), %s769_s25, 256  }
 0x192   : > { %1375 = vsyncadd (%p1144_p9), %s769_s25, 4294967040  ;;  %p22_p1 = scmp.ge.s32.totalorder %s1532_s14, 4   ;;  %s1722_s21 = smov %s1382_s22 }
 0x193   : > { %s1723_s22 = smov %s1386_s23  ;;  %s1724_s23 = smov %s1548_s17 }
 0x194   : > { %s1725_s24 = smov %s1532_s14  ;;  %24 = sbr.rel (!%p22_p1) target bundleno = 8 (0x8), region = 108 }
 0x199   :  { %774 = vsyncpa [#allocation4], 1 }
 0x19a   :  { %776 = vsyncpa [#allocation4 + $0x1], 1 }
 0x19b   :  { %777 = vsyncpa [#allocation9], 1 }
 0x19c   :  { %778 = vsyncpa [#allocation12], 1 }
 0x19d   :  { %779 = vsyncpa [#allocation5], 1 }
 0x19e   :  { %781 = vsyncpa [#allocation5 + $0x1], 1 }
 0x19f   :  { %782 = vsyncpa [#allocation6], 1 }
 0x1a0   :  { %784 = vsyncpa [#allocation6 + $0x1], 1 }

</bundles_post_ra>
